<compile_context>
chip_gen: v5e
topology: v5e:2x2
jax: 0.10.0
libtpu: 0.0.40
codegen_flags: <defaults>
</compile_context>

<pallas_src>
import functools
import math

import jax
import jax.numpy as jnp
from jax.experimental import pallas as pl
from jax.experimental.pallas import tpu as pltpu


def _round_up(x, m):
    return (x + m - 1) // m * m


def _bert_head_transform_kernel(x_ref, w_ref, p_ref, o_ref, *, eps, approx_gelu):
    """One row-tile of y = LayerNorm(gelu(x @ W_t + b)) * gamma + beta.

    x_ref : (tm, H)  activations (f32; cast in-kernel to w dtype for the bf16 path)
    w_ref : (H, H)   dense weight, PRE-TRANSPOSED to (in, out) at init -> plain
                     K-on-sublane contraction; no per-step weight transpose.
    p_ref : (3, H)   packed f32 [bias; ln_gamma; ln_beta], one constant block
    o_ref : (tm, H)  output tile

    Every op is row-independent (matmul row-wise, GELU elementwise, LayerNorm
    per-row), so the garbage rows of a ragged last tile never contaminate valid
    rows and their (possibly non-finite) results are discarded by the masked store.
    """
    x = x_ref[...]
    w = w_ref[...]
    if x.dtype != w.dtype:
        # In-kernel cast for the bf16 MXU fast path: VPU work hidden under the
        # MXU, no extra wrapper-side HBM round-trip of x.
        x = x.astype(w.dtype)
    h = jnp.dot(x, w, preferred_element_type=jnp.float32)

    p = p_ref[...].astype(jnp.float32)
    h = h + p[0:1, :]                                   # bias

    if approx_gelu:
        # tanh-approx GELU: the transcendental lands on the (otherwise idle) EUP
        # slot, unloading the VALU.  Useful on v6e/v7x where the erf polynomial
        # chain becomes the binding slot once the matmul runs in bf16; v5e gains
        # little (no bf16 VPU/EUP, MXU-bound).  Slight numeric deviation from the
        # torch erf GELU.
        k = math.sqrt(2.0 / math.pi)
        h = 0.5 * h * (1.0 + jnp.tanh(k * (h + 0.044715 * h * h * h)))
    else:
        # erf GELU in f32 -- exact semantics of the torch reference module.
        h = h * 0.5 * (1.0 + jax.lax.erf(h * (1.0 / math.sqrt(2.0))))

    # LayerNorm over the hidden (last) axis, f32 math.
    mean = jnp.mean(h, axis=-1, keepdims=True)
    cen = h - mean
    var = jnp.mean(cen * cen, axis=-1, keepdims=True)
    inv = jax.lax.rsqrt(var + eps)
    out = cen * inv * p[1:2, :] + p[2:3, :]

    o_ref[...] = out.astype(o_ref.dtype)


def prepare_dense_weight(weight, matmul_dtype=None):
    """One-time (model-init) weight prep.

    weight: (out, in) nn.Linear layout.  Returns the (in, out) transpose so the
    kernel contracts x @ W_t with K on the RHS sublane axis (no per-grid-step
    transpose inside the kernel).  Optionally casts to the MXU dtype (e.g. bf16)
    once, outside the hot path.
    """
    wt = weight.T
    if matmul_dtype is not None:
        wt = wt.astype(matmul_dtype)
    return wt


def bert_prediction_head_transform(x, weight_t, bias, gamma, beta, *, eps=1e-12,
                                   tm=512, out_dtype=None, approx_gelu=False,
                                   x_buffer_count=None):
    """y = LayerNorm(gelu(x @ W^T + b)) * gamma + beta  (BertPredictionHeadTransform).

    x        : [T, H] activations.
    weight_t : [H, H] pre-transposed (in, out) weight from prepare_dense_weight();
               pass a bf16 copy to use the bf16 MXU fast path (recommended on
               v6e/v7x) -- x is cast in-kernel and the epilogue stays f32.
    bias / gamma / beta : [H].
    out_dtype: output dtype (default x.dtype); use bf16 if the consumer accepts
               it to cut store bandwidth.
    tm       : row tile (sweep 256/512/1024); auto-shrunk to the VMEM budget.
    x_buffer_count : optional pipeline depth for the x input (e.g. 3 on v6e).

    Real BERT hidden sizes (768/1024/...) are multiples of 128 -> full-width
    lanes and unmasked stores; smaller H (demo) still works since blocks cover
    the full array dims.
    """
    T, H = x.shape
    assert weight_t.shape == (H, H)
    out_dtype = x.dtype if out_dtype is None else out_dtype

    # Row tile: big enough to fill the MXU and amortize the ~0.35 us per-grid-step
    # overhead, clamped to the (8-padded) row count.  No wrapper-side jnp.pad /
    # out[:T]: grid = cdiv(T, tm) and Pallas masks the partial last tile, saving
    # a full extra HBM round-trip of x / out for ragged T.
    tm_eff = max(8, min(tm, _round_up(T, 8)))

    # Packed (3, H) f32 [bias; gamma; beta]: one constant-index block instead of
    # three separately (8, H)-sublane-padded (1, H) blocks.
    params = jnp.stack([bias, gamma, beta]).astype(jnp.float32)

    # --- VMEM budget with a generation-aware physical ceiling -------------------
    itemsize_x = jnp.dtype(x.dtype).itemsize
    itemsize_w = jnp.dtype(weight_t.dtype).itemsize
    itemsize_o = jnp.dtype(out_dtype).itemsize

    def vmem_estimate(tm_b):
        return (2 * H * H * itemsize_w                      # W (worst case: double-buffered fallback)
                + 2 * tm_b * H * (itemsize_x + itemsize_o)  # double-buffered x / out tiles
                + 8 * tm_b * H * 4                          # f32 epilogue intermediates
                + 2 * 3 * H * 4                             # packed bias/gamma/beta
                + (4 << 20))                                # margin / internal scratch

    try:
        phys_vmem = int(pltpu.get_tpu_info().vmem_capacity_bytes)
    except Exception:
        # Hardware query unavailable: assume the smallest generation (v7x: 64 MiB/TC).
        phys_vmem = 64 << 20
    vmem_ceiling = max(16 << 20, phys_vmem - (8 << 20))

    while tm_eff > 64 and vmem_estimate(tm_eff) > vmem_ceiling:
        tm_eff = max(64, tm_eff // 2)
    vmem_limit = int(min(max(vmem_estimate(tm_eff), 32 << 20), vmem_ceiling))
    # TODO(synk): when the resident (H,H) weight itself blows the ceiling (H >= ~1536
    # f32 on v7x), add a K-split grid axis with a (tm,H) f32 VMEM accumulator so the
    # weight need not be fully resident.

    kernel = functools.partial(_bert_head_transform_kernel, eps=eps,
                               approx_gelu=approx_gelu)

    def x_spec():
        if x_buffer_count is not None:
            try:
                return pl.BlockSpec((tm_eff, H), lambda i: (i, 0),
                                    pipeline_mode=pl.Buffered(x_buffer_count))
            except (TypeError, AttributeError):
                pass
        return pl.BlockSpec((tm_eff, H), lambda i: (i, 0))

    w_spec_default = pl.BlockSpec((H, H), lambda i: (0, 0))
    try:
        # Constant index_map -> the weight block never changes across grid steps;
        # one VMEM buffer is enough, halving the resident-W footprint (matters on
        # v7x's 64 MiB/TC VMEM).
        w_spec_primary = pl.BlockSpec((H, H), lambda i: (0, 0),
                                      pipeline_mode=pl.Buffered(1))
    except (TypeError, AttributeError):
        w_spec_primary = w_spec_default

    def run(w_spec):
        return pl.pallas_call(
            kernel,
            out_shape=jax.ShapeDtypeStruct((T, H), out_dtype),
            grid_spec=pltpu.PrefetchScalarGridSpec(
                num_scalar_prefetch=0,
                grid=(pl.cdiv(T, tm_eff),),
                in_specs=[
                    x_spec(),                               # x row-tile
                    w_spec,                                 # resident W_t (in, out)
                    pl.BlockSpec((3, H), lambda i: (0, 0)), # packed bias/gamma/beta
                ],
                out_specs=pl.BlockSpec((tm_eff, H), lambda i: (i, 0)),
            ),
            compiler_params=pltpu.CompilerParams(
                dimension_semantics=("parallel",),
                vmem_limit_bytes=vmem_limit,
            ),
        )(x, weight_t, params)

    if w_spec_primary is w_spec_default:
        return run(w_spec_default)
    try:
        return run(w_spec_primary)
    except (pltpu.LoweringException, NotImplementedError, ValueError):
        # Narrow fallback: only "Buffered(1) not supported by this Mosaic version"
        # is expected here.  A genuine VMEM-limit / lowering failure reproduces on
        # the fallback spec (which uses >= the same VMEM) and still surfaces, so
        # nothing is silently swallowed.
        return run(w_spec_default)


if __name__ == "__main__":
    # Small demo config: batch=2, seq=8, hidden=32.
    batch, seq, hidden = 2, 8, 32
    eps = 1e-12

    key = jax.random.PRNGKey(0)
    k_x, k_w, k_b, k_g, k_be = jax.random.split(key, 5)

    hidden_states = jax.random.normal(k_x, (batch, seq, hidden), dtype=jnp.float32)
    weight = jax.random.normal(k_w, (hidden, hidden), dtype=jnp.float32) * 0.02  # (out, in)
    bias = jax.random.normal(k_b, (hidden,), dtype=jnp.float32) * 0.02
    gamma = jnp.ones((hidden,), dtype=jnp.float32) + 0.1 * jax.random.normal(k_g, (hidden,), dtype=jnp.float32)
    beta = 0.1 * jax.random.normal(k_be, (hidden,), dtype=jnp.float32)

    x2d = hidden_states.reshape(batch * seq, hidden)

    def ref_fn(x):
        h = x @ weight.T + bias
        h = h * 0.5 * (1.0 + jax.lax.erf(h / math.sqrt(2.0)))
        mu = h.mean(-1, keepdims=True)
        var = ((h - mu) ** 2).mean(-1, keepdims=True)
        return ((h - mu) * jax.lax.rsqrt(var + eps)) * gamma + beta

    ref = ref_fn(x2d)

    # One-time (init-time) weight prep: transpose to (in, out); separate bf16 copy
    # for the MXU fast path.  Both are outside the per-call hot path.
    w_t = prepare_dense_weight(weight)
    w_t_bf16 = prepare_dense_weight(weight, jnp.bfloat16)

    # 1) f32 MXU path (exact semantics of the torch module).
    out = bert_prediction_head_transform(x2d, w_t, bias, gamma, beta, eps=eps)
    jax.block_until_ready(out)
    assert out.shape == (batch * seq, hidden)
    assert jnp.allclose(out, ref, atol=1e-4, rtol=1e-4), "f32 path mismatch vs reference"

    # 2) bf16 MXU fast path (recommended on v6e/v7x); x is cast in-kernel, the
    #    GELU/LayerNorm epilogue stays f32.
    out_bf16 = bert_prediction_head_transform(x2d, w_t_bf16, bias, gamma, beta, eps=eps)
    jax.block_until_ready(out_bf16)
    assert jnp.allclose(out_bf16, ref, atol=7.5e-2, rtol=7.5e-2), "bf16 path mismatch vs reference"

    # 3) ragged row count (T not divisible by the row tile) -> masked partial last
    #    tile, no wrapper-side pad / slice HBM round-trips.
    out_r = bert_prediction_head_transform(x2d[:13], w_t, bias, gamma, beta, eps=eps)
    jax.block_until_ready(out_r)
    assert out_r.shape == (13, hidden)
    assert jnp.allclose(out_r, ref[:13], atol=1e-4, rtol=1e-4), "ragged-row path mismatch"

    print("KERNEL_OK")
</pallas_src>

<mosaic_0001>
module attributes {stable_mosaic.version = 11 : i64} {
  func.func @_bert_head_transform_kernel(%arg0: i32, %arg1: memref<16x32xf32, #tpu.memory_space<vmem>>, %arg2: memref<32x32xf32, #tpu.memory_space<vmem>>, %arg3: memref<3x32xf32, #tpu.memory_space<vmem>>, %arg4: memref<16x32xf32, #tpu.memory_space<vmem>>) attributes {dimension_semantics = [#tpu.dimension_semantics<parallel>], iteration_bounds = array<i64: 1>, scalar_prefetch = 0 : i64, scratch_operands = 0 : i64, tpu.core_type = #tpu.core_type<tc>, window_params = [{transform_indices = @transform_0, window_bounds = array<i64: 16, 32>}, {pipeline_mode = #tpu.pipeline_mode<synchronous>, transform_indices = @transform_1, window_bounds = array<i64: 32, 32>}, {pipeline_mode = #tpu.pipeline_mode<synchronous>, transform_indices = @transform_2, window_bounds = array<i64: 3, 32>}, {transform_indices = @transform_3, window_bounds = array<i64: 16, 32>}]} {
    %c0 = arith.constant 0 : index
    %c0_0 = arith.constant 0 : index
    %0 = vector.load %arg1[%c0, %c0_0] : memref<16x32xf32, #tpu.memory_space<vmem>>, vector<16x32xf32>
    %c0_1 = arith.constant 0 : index
    %c0_2 = arith.constant 0 : index
    %1 = vector.load %arg2[%c0_1, %c0_2] : memref<32x32xf32, #tpu.memory_space<vmem>>, vector<32x32xf32>
    %cst = arith.constant dense<0.000000e+00> : vector<16x32xf32>
    %2 = tpu.matmul %0, %1, %cst {dimension_numbers = #tpu.dot_dimension_numbers<[1], [0], [0], [1], [0, 0, 1, 1], [], []>} : vector<16x32xf32>, vector<32x32xf32>, vector<16x32xf32> -> vector<16x32xf32>
    %c0_3 = arith.constant 0 : index
    %c0_4 = arith.constant 0 : index
    %3 = vector.load %arg3[%c0_3, %c0_4] : memref<3x32xf32, #tpu.memory_space<vmem>>, vector<3x32xf32>
    %4 = vector.extract_strided_slice %3 {offsets = [0, 0], sizes = [1, 32], strides = [1, 1]} : vector<3x32xf32> to vector<1x32xf32>
    %5 = vector.broadcast %4 : vector<1x32xf32> to vector<16x32xf32>
    %6 = arith.addf %2, %5 : vector<16x32xf32>
    %cst_5 = arith.constant 5.000000e-01 : f32
    %7 = vector.broadcast %cst_5 : f32 to vector<16x32xf32>
    %8 = arith.mulf %6, %7 : vector<16x32xf32>
    %cst_6 = arith.constant 0.707106769 : f32
    %9 = vector.broadcast %cst_6 : f32 to vector<16x32xf32>
    %10 = arith.mulf %6, %9 : vector<16x32xf32>
    %11 = math.erf %10 : vector<16x32xf32>
    %cst_7 = arith.constant 1.000000e+00 : f32
    %12 = vector.broadcast %cst_7 : f32 to vector<16x32xf32>
    %13 = arith.addf %12, %11 : vector<16x32xf32>
    %14 = arith.mulf %8, %13 : vector<16x32xf32>
    %cst_8 = arith.constant dense<0.000000e+00> : vector<16xf32>
    %15 = vector.multi_reduction <add>, %14, %cst_8 [1] : vector<16x32xf32> to vector<16xf32>
    %16 = vector.shape_cast %15 : vector<16xf32> to vector<16x1xf32>
    %cst_9 = arith.constant 3.200000e+01 : f32
    %17 = vector.broadcast %cst_9 : f32 to vector<16x1xf32>
    %18 = arith.divf %16, %17 : vector<16x1xf32>
    %19 = vector.broadcast %18 : vector<16x1xf32> to vector<16x32xf32>
    %20 = arith.subf %14, %19 : vector<16x32xf32>
    %21 = arith.mulf %20, %20 : vector<16x32xf32>
    %cst_10 = arith.constant dense<0.000000e+00> : vector<16xf32>
    %22 = vector.multi_reduction <add>, %21, %cst_10 [1] : vector<16x32xf32> to vector<16xf32>
    %23 = vector.shape_cast %22 : vector<16xf32> to vector<16x1xf32>
    %cst_11 = arith.constant 3.200000e+01 : f32
    %24 = vector.broadcast %cst_11 : f32 to vector<16x1xf32>
    %25 = arith.divf %23, %24 : vector<16x1xf32>
    %cst_12 = arith.constant 9.99999996E-13 : f32
    %26 = vector.broadcast %cst_12 : f32 to vector<16x1xf32>
    %27 = arith.addf %25, %26 : vector<16x1xf32>
    %28 = math.rsqrt %27 : vector<16x1xf32>
    %29 = vector.broadcast %28 : vector<16x1xf32> to vector<16x32xf32>
    %30 = arith.mulf %20, %29 : vector<16x32xf32>
    %31 = vector.extract_strided_slice %3 {offsets = [1, 0], sizes = [1, 32], strides = [1, 1]} : vector<3x32xf32> to vector<1x32xf32>
    %32 = vector.broadcast %31 : vector<1x32xf32> to vector<16x32xf32>
    %33 = arith.mulf %30, %32 : vector<16x32xf32>
    %34 = vector.extract_strided_slice %3 {offsets = [2, 0], sizes = [1, 32], strides = [1, 1]} : vector<3x32xf32> to vector<1x32xf32>
    %35 = vector.broadcast %34 : vector<1x32xf32> to vector<16x32xf32>
    %36 = arith.addf %33, %35 : vector<16x32xf32>
    %c0_13 = arith.constant 0 : index
    %c0_14 = arith.constant 0 : index
    %37 = vector.load %arg4[%c0_13, %c0_14] : memref<16x32xf32, #tpu.memory_space<vmem>>, vector<16x32xf32>
    tpu.vector_store %arg4[%c0_13, %c0_14], %36 {strides = array<i32>} : memref<16x32xf32, #tpu.memory_space<vmem>>, vector<16x32xf32>,
    return
  }
  func.func @transform_0(%arg0: i32) -> (i32, i32) {
    %c0_i32 = arith.constant 0 : i32
    %c0_i32_0 = arith.constant 0 : i32
    return %arg0, %c0_i32 : i32, i32
  }
  func.func @transform_1(%arg0: i32) -> (i32, i32) {
    %c0_i32 = arith.constant 0 : i32
    %c0_i32_0 = arith.constant 0 : i32
    %c0_i32_1 = arith.constant 0 : i32
    return %c0_i32, %c0_i32_0 : i32, i32
  }
  func.func @transform_2(%arg0: i32) -> (i32, i32) {
    %c0_i32 = arith.constant 0 : i32
    %c0_i32_0 = arith.constant 0 : i32
    %c0_i32_1 = arith.constant 0 : i32
    return %c0_i32, %c0_i32_0 : i32, i32
  }
  func.func @transform_3(%arg0: i32) -> (i32, i32) {
    %c0_i32 = arith.constant 0 : i32
    %c0_i32_0 = arith.constant 0 : i32
    return %arg0, %c0_i32 : i32, i32
  }
}

</mosaic_0001>

<bundles_post_ra>
// kernel: tpu_custom_call.1
= control target key start
LH: loop header
LB: loop body
LE: loop exit
PB: predicated region body
PF: predicated region fallthrough
CT: control target
= control target key end

     0   :  { %8 = vsyncpa [#allocation3], 0  ;;  %s471_s0 = inlined_call_operand.hbm [shape: f32[16,32], index: 0, kind: input, shape index: {}]   ;;  %s472_s1 = inlined_call_operand.hbm [shape: f32[32,32], index: 1, kind: input, shape index: {}]   ;;  %s473_s2 = inlined_call_operand.hbm [shape: f32[3,32], index: 2, kind: input, shape index: {}]   ;;  %s474_s3 = inlined_call_operand.hbm [shape: f32[16,32], index: 3, kind: output, shape index: {}]  }
   0x1   :  { %9 = vsyncpa [#allocation6], 0 }
   0x2   :  { %10 = vsyncpa [#allocation4], 0  ;;  %s28_s14 = sshll.u32 %s472_s1, 4  ;;  %s392_s15 = smov [#allocation5]   ;;  %s29_s14 = int_to_ptr.hbm [resolvable:$true] %s28_s14 }
   0x3   :  { %s30_s16 = sshll.u32 %s392_s15, 4  ;;  %s15_s19 = sshll.u32 %s471_s0, 4  ;;  %s31_s16 = int_to_ptr.vmem [resolvable:$true] %s30_s16  ;;  %s16_s19 = int_to_ptr.hbm [resolvable:$true] %s15_s19 }
   0x4   :  { %s393_s20 = smov 128   ;;  %s394_s21 = smov 8  }
   0x5   :  { %36 = dma.hbm_to_vmem [thread:$0]  %s29_s14, 512, %s31_s16, [#allocation6], %s393_s20, %s393_s20, %s394_s21  }
   0x6   :  { %s395_s22 = smov [#allocation2]   ;;  %s42_s1 = sshll.u32 %s473_s2, 4  ;;  %s43_s1 = int_to_ptr.hbm [resolvable:$true] %s42_s1 }
   0x7   :  { %s17_s23 = sshll.u32 %s395_s22, 4  ;;  %s396_s0 = smov [#allocation7]   ;;  %s18_s23 = int_to_ptr.vmem [resolvable:$true] %s17_s23 }
   0x8   :  { %23 = dma.hbm_to_vmem [thread:$0]  %s16_s19, 256, %s18_s23, [#allocation3], %s393_s20, %s393_s20, %s394_s21  }
   0x9   :  { %s44_s26 = sshll.u32 %s396_s0, 4  ;;  %s45_s26 = int_to_ptr.vmem [resolvable:$true] %s44_s26 }
   0xa   :  { %47 = dma.hbm_to_vmem [thread:$0]  %s43_s1, 64, %s45_s26, [#allocation6]  }
   0xb   :  { %386 = dma.done.wait [#allocation3], 256  }
   0xc   :  { %387 = vsyncadd [#allocation3], 4294967040 }
   0xd   :  { %388 = dma.done.wait [#allocation6], 576  }
   0xe   :  { %389 = vsyncadd [#allocation6], 4294966720  ;;  %v65_v0 = vld [vmem:[#allocation5 + $0x18] sm:$0xff]  ;;  %v64_v1 = vld [vmem:[#allocation5 + $0x10] sm:$0xff]  ;;  %vm68_vm0 = vcmask 261120   ;;  %s398_s2 = smov [#allocation8]  }
   0xf   :  { %87 = vmatpush.msra.mxu0 %v65_v0  ;;  %269 = vmatpush.msra.mxu1 %v65_v0  ;;  %v63_v2 = vld [vmem:[#allocation5 + $0x8] sm:$0xff]  ;;  %v62_v3 = vld [vmem:[#allocation5] sm:$0xff]  ;;  %v60_v4 = vld [vmem:[#allocation2] sm:$0xff]  ;;  %s249_s27 = sshll.u32 %s398_s2, 4  ;;  %s251_s30 = sshll.u32 %s474_s3, 4  ;;  %s250_s27 = int_to_ptr.vmem [resolvable:$true] %s249_s27  ;;  %s252_s30 = int_to_ptr.hbm [resolvable:$true] %s251_s30 }
  0x10   :  { %v61_v5 = vld [vmem:[#allocation2 + $0x8] sm:$0xff]  ;;  %v436_v6 = vld [vmem:[#allocation7] sm:$0x7] }
  0x11   :  { %88 = vmatpush.msra.mxu0 %v64_v1  ;;  %270 = vmatpush.msra.mxu1 %v64_v1  ;;  %v67_v7 = vperm.slane %v436_v6, 0 }
  0x13   :  { %89 = vmatpush.msra.mxu0 %v63_v2  ;;  %271 = vmatpush.msra.mxu1 %v63_v2 }
  0x15   :  { %90 = vmatpush.msra.mxu0 %v62_v3  ;;  %272 = vmatpush.msra.mxu1 %v62_v3 }
  0x16   :  { %265 = vmatmul.msk.f32.vlgmr.msra.gmra.mxu0 %vm68_vm0, %v60_v4  ;;  %266 = vmatmul.msk.f32.vlgmr.msra.gmra.mxu1 %vm68_vm0, %v61_v5 }
  0x93   :  { %v92_v8 = vpop.f32.mrf.mxu0  ;;  %v95_v9 = vpop.f32.mrf.mxu1 }
  0x94   :  { %v439_v10 = vadd.f32 %v92_v8, %v67_v7  ;;  %v441_v11 = vadd.f32 %v95_v9, %v67_v7 }
  0x96   :  { %v444_v12 = vmul.f32 0.70710677, %v439_v10  ;;  %v447_v13 = vmul.f32 0.70710677, %v441_v11 }
  0x98   :  { %v102_v14 = vmul.f32 %v444_v12, %v444_v12  ;;  %v142_v15 = vmul.f32 %v447_v13, %v447_v13 }
  0x9a   :  { %v103_v16 = vmin.f32 %v102_v14, 16.0  ;;  %v143_v17 = vmin.f32 %v142_v15, 16.0 }
  0x9c   :  { %v104_v18 = vmul.f32 2.1237322e-06, %v103_v16  ;;  %v144_v19 = vmul.f32 2.1237322e-06, %v143_v17  ;;  %v115_v20 = vmul.f32 3.8918573e-05, %v103_v16 }
  0x9d   :  { %v155_v21 = vmul.f32 3.8918573e-05, %v143_v17 }
  0x9e   :  { %v105_v22 = vadd.f32 0.00028619796, %v104_v18  ;;  %v145_v23 = vadd.f32 0.00028619796, %v144_v19  ;;  %v116_v24 = vadd.f32 0.001143296, %v115_v20 }
  0x9f   :  { %v156_v25 = vadd.f32 0.001143296, %v155_v21 }
  0xa0   :  { %v106_v26 = vmul.f32 %v105_v22, %v103_v16  ;;  %v146_v27 = vmul.f32 %v145_v23, %v143_v17  ;;  %v117_v28 = vmul.f32 %v116_v24, %v103_v16  ;;  %v98_v24 = vmul.f32 0.5, %v439_v10 }
  0xa1   :  { %v157_v29 = vmul.f32 %v156_v25, %v143_v17 }
  0xa2   :  { %v107_v30 = vadd.f32 0.0036580483, %v106_v26  ;;  %v118_v31 = vadd.f32 0.014752088, %v117_v28  ;;  %v147_v33 = vadd.f32 0.0036580483, %v146_v27 }
  0xa3   :  { %v158_v32 = vadd.f32 0.014752088, %v157_v29  ;;  %v99_v29 = vmul.f32 0.5, %v441_v11 }
  0xa4   :  { %v119_v34 = vmul.f32 %v118_v31, %v103_v16  ;;  %v108_v36 = vmul.f32 %v107_v30, %v103_v16  ;;  %v148_v39 = vmul.f32 %v147_v33, %v143_v17  ;;  %v397_v31 = vmov 32.0  }
  0xa5   :  { %v159_v35 = vmul.f32 %v158_v32, %v143_v17 }
  0xa6   :  { %v120_v37 = vadd.f32 0.112945676, %v119_v34  ;;  %v109_v42 = vadd.f32 0.05243302, %v108_v36  ;;  %v149_v45 = vadd.f32 0.05243302, %v148_v39 }
  0xa7   :  { %v160_v38 = vadd.f32 0.112945676, %v159_v35 }
  0xa8   :  { %v121_v40 = vmul.f32 %v120_v37, %v103_v16  ;;  %v110_v48 = vmul.f32 %v109_v42, %v103_v16  ;;  %v150_v51 = vmul.f32 %v149_v45, %v143_v17 }
  0xa9   :  { %v161_v41 = vmul.f32 %v160_v38, %v143_v17 }
  0xaa   :  { %v122_v43 = vadd.f32 0.4994258, %v121_v40  ;;  %v111_v52 = vadd.f32 0.18741608, %v110_v48  ;;  %v151_v53 = vadd.f32 0.18741608, %v150_v51 }
  0xab   :  { %v162_v44 = vadd.f32 0.4994258, %v161_v41 }
  0xac   :  { %v123_v46 = vmul.f32 %v122_v43, %v103_v16  ;;  %v112_v55 = vmul.f32 %v111_v52, %v103_v16  ;;  %v152_v58 = vmul.f32 %v151_v53, %v143_v17 }
  0xad   :  { %v163_v47 = vmul.f32 %v162_v44, %v143_v17 }
  0xae   :  { %v124_v49 = vadd.f32 1.0, %v123_v46  ;;  %v113_v61 = vadd.f32 1.1283791, %v112_v55  ;;  %v153_v3 = vadd.f32 1.1283791, %v152_v58 }
  0xaf   :  { %v164_v50 = vadd.f32 1.0, %v163_v47 }
  0xb0   :  { %280 = vrcp.f32 %v124_v49  ;;  %v136_v62 = vand.u32 2147483648, %v124_v49  ;;  %v134_v1 = vand.u32 2147483647, %v124_v49  ;;  %vm130_vm3 = vweird.f32 %v124_v49 }
  0xb1   :  { %282 = vrcp.f32 %v164_v50  ;;  %v176_v2 = vand.u32 2147483648, %v164_v50  ;;  %v174_v5 = vand.u32 2147483647, %v164_v50  ;;  %vm170_vm5 = vweird.f32 %v164_v50 }
  0xb2   :  { %v137_v8 = vor.u32 1.1754944e-38, %v136_v62  ;;  %v114_v14 = vmul.f32 %v113_v61, %v444_v12  ;;  %vm135_vm6 = vcmp.eq.f32.partialorder %v134_v1, 8.507059e+37  ;;  %v154_v17 = vmul.f32 %v153_v3, %v447_v13 }
  0xb3   :  { %v177_v16 = vor.u32 1.1754944e-38, %v176_v2  ;;  %vm175_vm8 = vcmp.eq.f32.partialorder %v174_v5, 8.507059e+37  ;;  %284 = vrcp.f32 %v397_v31 }
  0xb6   :  { %v281_v54 = vpop.eup %280 }
  0xb7   :  { %v283_v56 = vpop.eup %282  ;;  %v126_v57 = vmul.f32 %v281_v54, %v124_v49  ;;  %vm131_vm1 = vweird.f32 %v281_v54 }
  0xb8   :  { %v166_v59 = vmul.f32 %v283_v56, %v164_v50  ;;  %vm171_vm2 = vweird.f32 %v283_v56  ;;  %vm132_vm4 = vmor %vm130_vm3, %vm131_vm1 }
  0xb9   :  { %v127_v60 = vsub.f32 1.0, %v126_v57  ;;  %vm172_vm7 = vmor %vm170_vm5, %vm171_vm2  ;;  %v285_v32 = vpop.eup %284 }
  0xba   :  { %v167_v63 = vsub.f32 1.0, %v166_v59  ;;  %v193_v33 = vmul.f32 32.0, %v285_v32  ;;  %vm197_vm9 = vweird.f32 %v285_v32 }
  0xbb   :  { %v128_v0 = vmul.f32 %v281_v54, %v127_v60  ;;  %v237_v60 = vperm.slane %v436_v6, 1 }
  0xbc   :  { %v168_v4 = vmul.f32 %v283_v56, %v167_v63  ;;  %v194_v34 = vsub.f32 1.0, %v193_v33  ;;  %v240_v63 = vperm.slane %v436_v6, 2 }
  0xbd   :  { %v129_v7 = vadd.f32 %v281_v54, %v128_v0 }
  0xbe   :  { %v169_v9 = vadd.f32 %v283_v56, %v168_v4  ;;  %v195_v35 = vmul.f32 %v285_v32, %v194_v34 }
  0xbf   :  { %v133_v15 = vsel %vm132_vm4, %v281_v54, %v129_v7 }
  0xc0   :  { %v138_v18 = vsel %vm135_vm6, %v137_v8, %v133_v15  ;;  %v173_v19 = vsel %vm172_vm7, %v283_v56, %v169_v9  ;;  %v196_v10 = vadd.f32 %v285_v32, %v195_v35 }
  0xc1   :  { %v139_v20 = vmul.f32 %v138_v18, %v114_v14  ;;  %v178_v21 = vsel %vm175_vm8, %v177_v16, %v173_v19 }
  0xc2   :  { %v179_v22 = vmul.f32 %v178_v21, %v154_v17  ;;  %v198_v36 = vsel %vm197_vm9, %v285_v32, %v196_v10 }
  0xc3   :  { %v267_v23 = vclamps-f32 %v139_v20, 1.0 }
  0xc4   :  { %v268_v26 = vclamps-f32 %v179_v22, 1.0 }
  0xc5   :  { %v182_v25 = vadd.f32 1.0, %v267_v23 }
  0xc6   :  { %v183_v28 = vadd.f32 1.0, %v268_v26 }
  0xc7   :  { %v184_v27 = vmul.f32 %v182_v25, %v98_v24 }
  0xc8   :  { %v185_v30 = vmul.f32 %v183_v28, %v99_v29 }
  0xc9   :  { %v186_v12 = vsel %vm68_vm0, %v184_v27, 0.0 }
  0xca   :  { %187 = vadd.xlane.f32.xlu0 %v186_v12  ;;  %v189_v13 = vsel %vm68_vm0, %v185_v30, 0.0 }
  0xd2   :  { %190 = vadd.xlane.f32.xlu0 %v189_v13 }
 0x13d   :  { %v188_v37 = vpop.xlane.xlu0 %187 }
 0x13e   :  { %v199_v38 = vmul.f32 %v198_v36, %v188_v37 }
 0x140   :  { %v201_v39 = vsub.f32 %v184_v27, %v199_v38 }
 0x142   :  { %v203_v40 = vmul.f32 %v201_v39, %v201_v39 }
 0x144   :  { %v205_v41 = vsel %vm68_vm0, %v203_v40, 0.0 }
 0x145   :  { %206 = vadd.xlane.f32.xlu1 %v205_v41  ;;  %v191_v11 = vpop.xlane.xlu0 %190 }
 0x146   :  { %v200_v42 = vmul.f32 %v198_v36, %v191_v11 }
 0x148   :  { %v202_v43 = vsub.f32 %v185_v30, %v200_v42 }
 0x14a   :  { %v204_v44 = vmul.f32 %v202_v43, %v202_v43 }
 0x14c   :  { %v208_v45 = vsel %vm68_vm0, %v204_v44, 0.0 }
 0x14d   :  { %209 = vadd.xlane.f32.xlu1 %v208_v45 }
 0x1b8   :  { %v207_v46 = vpop.xlane.xlu1 %206 }
 0x1b9   :  { %v211_v47 = vmul.f32 %v207_v46, %v198_v36 }
 0x1bb   :  { %v213_v48 = vadd.f32 1e-12, %v211_v47 }
 0x1bd   :  { %286 = vrsqrt.f32 %v213_v48  ;;  %vm221_vm11 = vweird.f32 %v213_v48 }
 0x1c0   :  { %v210_v49 = vpop.xlane.xlu1 %209 }
 0x1c1   :  { %v212_v50 = vmul.f32 %v210_v49, %v198_v36 }
 0x1c3   :  { %v287_v51 = vpop.eup %286  ;;  %v214_v52 = vadd.f32 1e-12, %v212_v50 }
 0x1c4   :  { %v216_v53 = vmul.f32 %v287_v51, %v213_v48  ;;  %vm222_vm10 = vweird.f32 %v287_v51 }
 0x1c5   :  { %288 = vrsqrt.f32 %v214_v52  ;;  %vm223_vm12 = vmor %vm221_vm11, %vm222_vm10  ;;  %vm231_vm14 = vweird.f32 %v214_v52 }
 0x1c6   :  { %v217_v54 = vmul.f32 %v287_v51, %v216_v53 }
 0x1c8   :  { %v218_v55 = vmul.f32 0.5, %v217_v54 }
 0x1ca   :  { %v219_v56 = vsub.f32 1.5, %v218_v55 }
 0x1cb   :  { %v289_v57 = vpop.eup %288 }
 0x1cc   :  { %v220_v58 = vmul.f32 %v287_v51, %v219_v56  ;;  %v226_v59 = vmul.f32 %v289_v57, %v214_v52  ;;  %vm232_vm13 = vweird.f32 %v289_v57 }
 0x1cd   :  { %vm233_vm15 = vmor %vm231_vm14, %vm232_vm13 }
 0x1ce   :  { %v224_v61 = vsel %vm223_vm12, %v287_v51, %v220_v58  ;;  %v227_v62 = vmul.f32 %v289_v57, %v226_v59 }
 0x1cf   :  { %v235_v0 = vmul.f32 %v224_v61, %v201_v39 }
 0x1d0   :  { %v228_v1 = vmul.f32 0.5, %v227_v62 }
 0x1d1   :  { %v238_v2 = vmul.f32 %v237_v60, %v235_v0 }
 0x1d2   :  { %v229_v3 = vsub.f32 1.5, %v228_v1 }
 0x1d3   :  { %v241_v4 = vadd.f32 %v240_v63, %v238_v2 }
 0x1d4   :  { %v230_v5 = vmul.f32 %v289_v57, %v229_v3 }
 0x1d5   :  { %243 = vst.msk [vmem:[#allocation8] sm:$0xff] %vm68_vm0, %v241_v4 }
 0x1d6   :  { %v234_v7 = vsel %vm233_vm15, %v289_v57, %v230_v5 }
 0x1d7   :  { %v236_v8 = vmul.f32 %v234_v7, %v202_v43 }
 0x1d9   :  { %v239_v6 = vmul.f32 %v237_v60, %v236_v8 }
 0x1db   :  { %v242_v9 = vadd.f32 %v240_v63, %v239_v6 }
 0x1dd   :  { %244 = vst.msk [vmem:[#allocation8 + $0x8] sm:$0xff] %vm68_vm0, %v242_v9 }
 0x1de   :  { %257 = dma.vmem_to_hbm [thread:$0]  %s250_s27, 256, %s252_s30, [#allocation4], %s393_s20, %s393_s20, %s394_s21  }
 0x1df   :  { %390 = dma.done.wait [#allocation4], 256  }
 0x1e0   :  { %391 = vsyncadd [#allocation4], 4294967040 }
 0x1e1   :  { %262 = vsyncpa [#allocation3], 1 }
 0x1e2   :  { %263 = vsyncpa [#allocation6], 1 }
 0x1e3   :  { %264 = vsyncpa [#allocation4], 1 }

</bundles_post_ra>
